<compile_context>
chip_gen: v6e
topology: v6e:2x2x1
jax: 0.10.0
libtpu: 0.0.40
codegen_flags: <defaults>
</compile_context>

<pallas_src>
import functools

import jax
import jax.numpy as jnp
from jax.experimental import pallas as pl
from jax.experimental.pallas import tpu as pltpu

_LANE = 128
_SUBLANE = 8
_LN_EPS = 1e-5


def _round_up(x, m):
    return (x + m - 1) // m * m


def _vmem_capacity_bytes():
    """Physical VMEM per core; conservative 64 MiB (v7x/TC) if the query fails."""
    try:
        info = pltpu.get_tpu_info()
        for attr in ("vmem_capacity_bytes", "vmem_size_bytes", "vmem_bytes"):
            v = getattr(info, attr, None)
            if v:
                return int(v)
    except Exception:
        pass
    return 64 << 20


def _budgets():
    """(resident_weight_budget, vmem_cap), generation-aware.

    128 MiB parts (v5e/v6e): resident weights up to ~96 MiB, limit 110 MiB —
    v5e is weight-streaming bound so residency is the biggest lever there.
    64 MiB parts (v7x per-TC): resident only below ~30 MiB, limit 56 MiB so the
    row-tile working set + compiler scratch always keep headroom.
    """
    phys = _vmem_capacity_bytes()
    if phys >= (100 << 20):
        return 96 << 20, 110 << 20
    return 30 << 20, 56 << 20


# --------------------------------------------------------------------------
# Kernel 1: resident-weights path (W1, W2 fully in VMEM, single-buffered).
# --------------------------------------------------------------------------
def _ffn_resident_kernel(x_ref, w1_ref, b1_ref, w2_ref, b2_ref, o_ref, *, inv_f):
    f32 = jnp.float32
    # First matmul: native-dtype operands straight to the MXU, f32 accumulate.
    h = jnp.dot(x_ref[...], w1_ref[...], preferred_element_type=f32)
    h = jnp.maximum(h + b1_ref[...].astype(f32), 0.0)

    # Two-pass LayerNorm stats (h fully resident): no E[h^2]-E[h]^2 cancellation.
    # gamma/beta are folded into W2/b2 outside the kernel.
    mean = jnp.sum(h, axis=-1, keepdims=True) * inv_f
    d = h - mean
    var = jnp.sum(d * d, axis=-1, keepdims=True) * inv_f
    hn = d * jax.lax.rsqrt(var + _LN_EPS)

    out = jnp.dot(hn.astype(w2_ref.dtype), w2_ref[...], preferred_element_type=f32)
    o_ref[...] = (out + b2_ref[...].astype(f32)).astype(o_ref.dtype)


def _pallas_ffn_resident(x2d, w1, b1, w2, b2, *, tm, vmem_cap):
    M, Ep = x2d.shape
    F = w1.shape[1]
    isz_in = x2d.dtype.itemsize
    isz_w = w1.dtype.itemsize

    # Buffered(1) weights -> single copy in VMEM; double-buffered x/out streams;
    # f32 intermediates (h, hn).
    need = ((2 * Ep * F + F) * isz_w + Ep * b2.dtype.itemsize
            + 4 * tm * Ep * isz_in
            + 2 * tm * F * 4)
    vmem_limit = int(min(max(need * 5 // 4 + (2 << 20), 16 << 20), vmem_cap))

    const = dict(pipeline_mode=pl.Buffered(1))   # constant index -> no double buffer
    cost = pl.CostEstimate(
        flops=4 * M * Ep * F,
        transcendentals=M,
        bytes_accessed=2 * M * Ep * isz_in + (2 * Ep * F + F) * isz_w + Ep * 4,
    )

    return pl.pallas_call(
        functools.partial(_ffn_resident_kernel, inv_f=1.0 / F),
        out_shape=jax.ShapeDtypeStruct((M, Ep), x2d.dtype),
        grid_spec=pltpu.PrefetchScalarGridSpec(
            num_scalar_prefetch=0,
            grid=(M // tm,),
            in_specs=[
                pl.BlockSpec((tm, Ep), lambda i: (i, 0)),            # x rows (streamed)
                pl.BlockSpec((Ep, F), lambda i: (0, 0), **const),    # W1 (resident)
                pl.BlockSpec((1, F), lambda i: (0, 0), **const),     # b1
                pl.BlockSpec((F, Ep), lambda i: (0, 0), **const),    # W2' (gamma folded)
                pl.BlockSpec((1, Ep), lambda i: (0, 0), **const),    # b2' (beta folded)
            ],
            out_specs=pl.BlockSpec((tm, Ep), lambda i: (i, 0)),
        ),
        compiler_params=pltpu.CompilerParams(
            dimension_semantics=("parallel",),
            vmem_limit_bytes=vmem_limit,
        ),
        cost_estimate=cost,
    )(x2d, w1, b1, w2, b2)


# --------------------------------------------------------------------------
# Kernel 2: large-weight path (ffn dim tiled; for weight sets that do not fit
# the resident budget).  Grid = (row_tiles, 2 passes, ffn_tiles).
#   pass 0: h_f = relu(x @ W1_f + b1_f) staged in VMEM (weight dtype),
#           running f32 sums for LayerNorm stats
#   pass 1: normalize each staged tile, accumulate hn_f @ W2'_f into f32 acc
# --------------------------------------------------------------------------
def _ffn_ftiled_kernel(x_ref, w1_ref, b1_ref, w2_ref, b2_ref, o_ref,
                       h_ref, s1_ref, s2_ref, acc_ref, *, inv_f):
    f32 = jnp.float32
    p = pl.program_id(1)     # 0: matmul1+ReLU+stats, 1: LayerNorm+matmul2
    fi = pl.program_id(2)    # ffn-dim tile index
    nf = pl.num_programs(2)

    @pl.when(jnp.logical_and(p == 0, fi == 0))
    def _init():
        s1_ref[...] = jnp.zeros_like(s1_ref)
        s2_ref[...] = jnp.zeros_like(s2_ref)
        acc_ref[...] = jnp.zeros_like(acc_ref)

    @pl.when(p == 0)
    def _pass0():
        h = jnp.dot(x_ref[...], w1_ref[...], preferred_element_type=f32)
        h = jnp.maximum(h + b1_ref[...].astype(f32), 0.0)
        # Stats from the f32 result (before any narrowing cast for staging).
        s1_ref[...] += jnp.sum(h, axis=-1, keepdims=True)
        s2_ref[...] += jnp.sum(h * h, axis=-1, keepdims=True)
        h_ref[fi] = h.astype(h_ref.dtype)

    @pl.when(p == 1)
    def _pass1():
        mean = s1_ref[...] * inv_f
        rstd = jax.lax.rsqrt(s2_ref[...] * inv_f - mean * mean + _LN_EPS)
        hn = (h_ref[fi].astype(f32) - mean) * rstd
        acc_ref[...] += jnp.dot(hn.astype(w2_ref.dtype), w2_ref[...],
                                preferred_element_type=f32)

    @pl.when(jnp.logical_and(p == 1, fi == nf - 1))
    def _finalize():
        o_ref[...] = (acc_ref[...] + b2_ref[...].astype(f32)).astype(o_ref.dtype)


def _pallas_ffn_ftiled(x2d, w1, b1, w2, b2, *, tm, tf, vmem_cap):
    M, Ep = x2d.shape
    F = w1.shape[1]
    nf = F // tf
    isz_in = x2d.dtype.itemsize
    isz_w = w1.dtype.itemsize

    need = (4 * Ep * tf * isz_w                 # W1/W2 tiles, double-buffered
            + 4 * tm * Ep * isz_in              # x / out streams, double-buffered
            + tm * F * isz_w                    # staged relu output (weight dtype)
            + tm * Ep * 4 + 2 * tm * 4          # f32 accumulator + stats
            + 2 * tf * b1.dtype.itemsize + Ep * b2.dtype.itemsize)
    vmem_limit = int(min(max(need * 5 // 4 + (2 << 20), 16 << 20), vmem_cap))

    n_m = M // tm
    cost = pl.CostEstimate(
        flops=4 * M * Ep * F,
        transcendentals=M,
        bytes_accessed=2 * M * Ep * isz_in + n_m * (2 * Ep * F + F) * isz_w,
    )

    return pl.pallas_call(
        functools.partial(_ffn_ftiled_kernel, inv_f=1.0 / F),
        out_shape=jax.ShapeDtypeStruct((M, Ep), x2d.dtype),
        grid_spec=pltpu.PrefetchScalarGridSpec(
            num_scalar_prefetch=0,
            grid=(n_m, 2, nf),
            in_specs=[
                pl.BlockSpec((tm, Ep), lambda i, p, f: (i, 0)),
                # W1/b1 walk the ffn tiles during pass 0 and stay frozen on the
                # last tile during pass 1 (index unchanged => no re-fetch).
                pl.BlockSpec((Ep, tf), lambda i, p, f: (0, f + p * (nf - 1 - f))),
                pl.BlockSpec((1, tf), lambda i, p, f: (0, f + p * (nf - 1 - f))),
                # W2' sits on tile 0 during pass 0 and walks during pass 1.
                pl.BlockSpec((tf, Ep), lambda i, p, f: (p * f, 0)),
                pl.BlockSpec((1, Ep), lambda i, p, f: (0, 0),
                             pipeline_mode=pl.Buffered(1)),
            ],
            out_specs=pl.BlockSpec((tm, Ep), lambda i, p, f: (i, 0)),
            scratch_shapes=[
                pltpu.VMEM((nf, tm, tf), w1.dtype),      # staged relu(x@W1+b1)
                pltpu.VMEM((tm, 1), jnp.float32),        # sum(h)
                pltpu.VMEM((tm, 1), jnp.float32),        # sum(h*h)
                pltpu.VMEM((tm, Ep), jnp.float32),       # second-matmul accumulator
            ],
        ),
        compiler_params=pltpu.CompilerParams(
            dimension_semantics=("parallel", "arbitrary", "arbitrary"),
            vmem_limit_bytes=vmem_limit,
        ),
        cost_estimate=cost,
    )(x2d, w1, b1, w2, b2)


# --------------------------------------------------------------------------
# Wrapper: affine fold, padding, tile selection, path selection.
# --------------------------------------------------------------------------
def _ffn_forward(x, params, *, force_ftiled=False, tf=None,
                 cast_weights_to_bf16=False):
    w1, b1, gamma, beta, w2, b2 = params
    B, S, E = x.shape
    F = w1.shape[1]
    M = B * S
    f32 = jnp.float32

    resident_budget, vmem_cap = _budgets()
    plan_budget = vmem_cap - (4 << 20)          # headroom for compiler scratch

    b1 = b1.reshape(1, F)
    gamma = gamma.reshape(1, F)
    beta = beta.reshape(1, F)
    b2 = b2.reshape(1, E)

    # Fold the LayerNorm affine into the second Linear (exact, done in f32):
    #   W2' = gamma[:, None] * W2        b2' = beta @ W2 + b2
    w2f = gamma.astype(f32).reshape(F, 1) * w2.astype(f32)
    b2 = beta.astype(f32) @ w2.astype(f32) + b2.astype(f32)   # keep f32 (tiny)
    w2 = w2f.astype(w2.dtype)

    if cast_weights_to_bf16 and w1.dtype == jnp.float32:
        # Halves weight residency / streaming and uses the bf16 MXU on v6e/v7x;
        # biases and all accumulation stay f32.
        w1 = w1.astype(jnp.bfloat16)
        w2 = w2.astype(jnp.bfloat16)

    # Pad embed dim to a lane-dense multiple of 128 (zero rows/cols of W1/W2/b2
    # keep the math bit-identical).  The ffn dim is never padded (LayerNorm).
    Ep = _round_up(E, _LANE)
    x2d = x.reshape(M, E)
    if Ep != E:
        x2d = jnp.pad(x2d, ((0, 0), (0, Ep - E)))
        w1 = jnp.pad(w1, ((0, Ep - E), (0, 0)))
        w2 = jnp.pad(w2, ((0, 0), (0, Ep - E)))
        b2 = jnp.pad(b2, ((0, 0), (0, Ep - E)))

    isz_in = x2d.dtype.itemsize
    isz_w = w1.dtype.itemsize
    weight_bytes = 2 * Ep * F * isz_w

    use_tiled = force_ftiled or weight_bytes > resident_budget
    if use_tiled and F % _LANE != 0:
        # TODO(synk): masked tail ffn tile for huge weights with F % 128 != 0;
        # fall back to the resident path for now.
        use_tiled = False

    # Row alignment: 8 sublanes for 4-byte data, 16 for bf16 (packed sublanes).
    row_align = _SUBLANE * (4 // isz_in)
    if use_tiled:
        row_align = max(row_align, _SUBLANE * (4 // isz_w))   # staged-h dtype

    tm_target = 512
    if use_tiled:
        # tf is chosen BEFORE tm so the combined plan never exceeds the cap.
        if tf is None:
            # Production default keeps tf >= 512 when it fits (amortizes the
            # ~600-cycle per-grid-step overhead).
            tf = next((t for t in (2048, 1024, 512, 256, 128)
                       if F % t == 0 and 4 * Ep * t * isz_w <= plan_budget // 3),
                      128)

        def _need_t(t_m, t_f):
            return (4 * Ep * t_f * isz_w + 4 * t_m * Ep * isz_in
                    + t_m * F * isz_w + t_m * Ep * 4 + 2 * t_m * 4)

        tm = min(tm_target, _round_up(M, row_align))
        while tm > 256 and _need_t(tm, tf) > plan_budget:
            tm = max(256, tm // 2)
        while tf > 128 and F % (tf // 2) == 0 and _need_t(tm, tf) > plan_budget:
            tf //= 2
        while tm > row_align and _need_t(tm, tf) > plan_budget:   # last resort
            tm = max(row_align, _round_up(tm // 2, row_align))
    else:
        def _need_r(t_m):
            return (weight_bytes + (F + Ep) * 4
                    + 4 * t_m * Ep * isz_in + 2 * t_m * F * 4)

        tm = min(tm_target, _round_up(M, row_align))
        while tm > 256 and _need_r(tm) > plan_budget:
            tm = max(256, tm // 2)
        if _need_r(tm) > plan_budget and F % _LANE == 0 and not force_ftiled:
            # Resident weights + a >=256-row tile don't fit: stream the ffn dim
            # rather than starve the MXU with tiny row tiles.
            return _ffn_forward(x, params, force_ftiled=True, tf=tf,
                                cast_weights_to_bf16=cast_weights_to_bf16)
        while tm > row_align and _need_r(tm) > plan_budget:       # last resort
            tm = max(row_align, _round_up(tm // 2, row_align))

    # Keep both v7x TensorCores busy: ensure >=2 row-tile grid steps when there
    # are enough rows, without dropping below a 256-row MXU-friendly tile.
    if M > 256 and tm > 256 and _round_up(M, tm) // tm < 2:
        tm = max(256, _round_up(tm // 2, row_align))

    M_pad = _round_up(M, tm)
    if M_pad != M:
        x2d = jnp.pad(x2d, ((0, M_pad - M), (0, 0)))

    if use_tiled:
        y = _pallas_ffn_ftiled(x2d, w1, b1, w2, b2, tm=tm, tf=tf, vmem_cap=vmem_cap)
    else:
        y = _pallas_ffn_resident(x2d, w1, b1, w2, b2, tm=tm, vmem_cap=vmem_cap)

    return y[:M, :E].reshape(B, S, E)


def dual_feedforward(x1, x2, params1, params2, *, cast_weights_to_bf16=False):
    """x1: [B, S1, E], x2: [B, S2, E] -> (y1, y2), same shapes (eval mode)."""
    # The two modality FFNs are independent; each call's "parallel" row axis is
    # megacore-sharded across TensorCores.
    # TODO(synk): on v7x, fuse both modalities into one pallas_call (leading
    # size-2 parallel axis over stacked weights) or shard the ffn dim across
    # the two TCs via pl.core_map for the 64-128 MiB weight band.
    f = functools.partial(_ffn_forward, cast_weights_to_bf16=cast_weights_to_bf16)
    return f(x1, params1), f(x2, params2)


# --------------------------------------------------------------------------
# Params / reference / test.
# --------------------------------------------------------------------------
def init_ffn_params(key, embed_dim, ffn_dim, dtype=jnp.float32):
    k1, k2, k3, k4 = jax.random.split(key, 4)
    w1 = jax.random.normal(k1, (embed_dim, ffn_dim), dtype) * (1.0 / embed_dim ** 0.5)
    b1 = jax.random.normal(k2, (1, ffn_dim), dtype) * 0.02
    gamma = jnp.ones((1, ffn_dim), dtype)
    beta = jnp.zeros((1, ffn_dim), dtype)
    w2 = jax.random.normal(k3, (ffn_dim, embed_dim), dtype) * (1.0 / ffn_dim ** 0.5)
    b2 = jax.random.normal(k4, (1, embed_dim), dtype) * 0.02
    return (w1, b1, gamma, beta, w2, b2)


def _ffn_ref(x, p):
    w1, b1, gamma, beta, w2, b2 = p
    h = jnp.maximum(x @ w1 + b1.reshape(-1), 0.0)
    mean = jnp.mean(h, axis=-1, keepdims=True)
    var = jnp.mean((h - mean) ** 2, axis=-1, keepdims=True)
    hn = (h - mean) / jnp.sqrt(var + _LN_EPS) * gamma.reshape(-1) + beta.reshape(-1)
    return hn @ w2 + b2.reshape(-1)


if __name__ == "__main__":
    key = jax.random.PRNGKey(0)
    kx1, kx2, kp1, kp2, kx3, kp3 = jax.random.split(key, 6)

    # --- Config A: f32, resident-weights path (toy DualFormer sizes) ---------
    B, S1, S2, E, Fd = 2, 8, 16, 32, 64
    x1 = jax.random.normal(kx1, (B, S1, E), jnp.float32)
    x2 = jax.random.normal(kx2, (B, S2, E), jnp.float32)
    params1 = init_ffn_params(kp1, E, Fd)
    params2 = init_ffn_params(kp2, E, Fd)

    y1, y2 = dual_feedforward(x1, x2, params1, params2)
    jax.block_until_ready((y1, y2))
    r1, r2 = _ffn_ref(x1, params1), _ffn_ref(x2, params2)
    assert y1.shape == x1.shape and y2.shape == x2.shape
    assert jnp.allclose(y1, r1, atol=2e-4, rtol=2e-4)
    assert jnp.allclose(y2, r2, atol=2e-4, rtol=2e-4)

    # --- Config B: bf16 weights/activations (v6e/v7x MXU bf16 path) ----------
    to_bf16 = lambda t: t.astype(jnp.bfloat16)
    x1b, x2b = to_bf16(x1), to_bf16(x2)
    p1b = tuple(to_bf16(t) for t in params1)
    p2b = tuple(to_bf16(t) for t in params2)
    y1b, y2b = dual_feedforward(x1b, x2b, p1b, p2b)
    jax.block_until_ready((y1b, y2b))
    r1b = _ffn_ref(x1b.astype(jnp.float32), tuple(t.astype(jnp.float32) for t in p1b))
    r2b = _ffn_ref(x2b.astype(jnp.float32), tuple(t.astype(jnp.float32) for t in p2b))
    assert jnp.allclose(y1b.astype(jnp.float32), r1b, atol=0.15, rtol=0.1)
    assert jnp.allclose(y2b.astype(jnp.float32), r2b, atol=0.15, rtol=0.1)

    # --- Config C: force the ffn-tiled (large-weight) path, f32 --------------
    E2, F2, S3 = 128, 256, 24
    x3 = jax.random.normal(kx3, (2, S3, E2), jnp.float32)
    params3 = init_ffn_params(kp3, E2, F2)
    y3 = _ffn_forward(x3, params3, force_ftiled=True, tf=128)   # tf=128 test-only
    jax.block_until_ready(y3)
    r3 = _ffn_ref(x3, params3)
    assert y3.shape == x3.shape
    assert jnp.allclose(y3, r3, atol=2e-3, rtol=2e-3)

    # --- Config D: ffn-tiled path with bf16 staging of the ReLU output -------
    x3b = to_bf16(x3)
    p3b = tuple(to_bf16(t) for t in params3)
    y3b = _ffn_forward(x3b, p3b, force_ftiled=True, tf=128)
    jax.block_until_ready(y3b)
    r3b = _ffn_ref(x3b.astype(jnp.float32), tuple(t.astype(jnp.float32) for t in p3b))
    assert jnp.allclose(y3b.astype(jnp.float32), r3b, atol=0.2, rtol=0.15)

    # --- Config E: f32 inputs with optional bf16 weight cast -----------------
    y1c, y2c = dual_feedforward(x1, x2, params1, params2, cast_weights_to_bf16=True)
    jax.block_until_ready((y1c, y2c))
    assert jnp.allclose(y1c, r1, atol=0.1, rtol=0.1)
    assert jnp.allclose(y2c, r2, atol=0.1, rtol=0.1)

    print("KERNEL_OK")
</pallas_src>

<mosaic_0001>
module attributes {stable_mosaic.version = 11 : i64} {
  func.func @_ffn_resident_kernel(%arg0: i32, %arg1: memref<16x128xf32, #tpu.memory_space<vmem>>, %arg2: memref<128x64xf32, #tpu.memory_space<vmem>>, %arg3: memref<1x64xf32, #tpu.memory_space<vmem>>, %arg4: memref<64x128xf32, #tpu.memory_space<vmem>>, %arg5: memref<1x128xf32, #tpu.memory_space<vmem>>, %arg6: memref<16x128xf32, #tpu.memory_space<vmem>>) attributes {dimension_semantics = [#tpu.dimension_semantics<parallel>], iteration_bounds = array<i64: 1>, scalar_prefetch = 0 : i64, scratch_operands = 0 : i64, tpu.core_type = #tpu.core_type<tc>, window_params = [{transform_indices = @transform_0, window_bounds = array<i64: 16, 128>}, {pipeline_mode = #tpu.pipeline_mode<synchronous>, transform_indices = @transform_1, window_bounds = array<i64: 128, 64>}, {pipeline_mode = #tpu.pipeline_mode<synchronous>, transform_indices = @transform_2, window_bounds = array<i64: 1, 64>}, {pipeline_mode = #tpu.pipeline_mode<synchronous>, transform_indices = @transform_3, window_bounds = array<i64: 64, 128>}, {pipeline_mode = #tpu.pipeline_mode<synchronous>, transform_indices = @transform_4, window_bounds = array<i64: 1, 128>}, {transform_indices = @transform_5, window_bounds = array<i64: 16, 128>}]} {
    %c0 = arith.constant 0 : index
    %c0_0 = arith.constant 0 : index
    %0 = vector.load %arg1[%c0, %c0_0] : memref<16x128xf32, #tpu.memory_space<vmem>>, vector<16x128xf32>
    %c0_1 = arith.constant 0 : index
    %c0_2 = arith.constant 0 : index
    %1 = vector.load %arg2[%c0_1, %c0_2] : memref<128x64xf32, #tpu.memory_space<vmem>>, vector<128x64xf32>
    %cst = arith.constant dense<0.000000e+00> : vector<16x64xf32>
    %2 = tpu.matmul %0, %1, %cst {dimension_numbers = #tpu.dot_dimension_numbers<[1], [0], [0], [1], [0, 0, 1, 1], [], []>} : vector<16x128xf32>, vector<128x64xf32>, vector<16x64xf32> -> vector<16x64xf32>
    %c0_3 = arith.constant 0 : index
    %c0_4 = arith.constant 0 : index
    %3 = vector.load %arg3[%c0_3, %c0_4] : memref<1x64xf32, #tpu.memory_space<vmem>>, vector<1x64xf32>
    %4 = vector.broadcast %3 : vector<1x64xf32> to vector<16x64xf32>
    %5 = arith.addf %2, %4 : vector<16x64xf32>
    %cst_5 = arith.constant 0.000000e+00 : f32
    %6 = vector.broadcast %cst_5 : f32 to vector<16x64xf32>
    %7 = arith.maximumf %5, %6 : vector<16x64xf32>
    %cst_6 = arith.constant dense<0.000000e+00> : vector<16xf32>
    %8 = vector.multi_reduction <add>, %7, %cst_6 [1] : vector<16x64xf32> to vector<16xf32>
    %9 = vector.shape_cast %8 : vector<16xf32> to vector<16x1xf32>
    %cst_7 = arith.constant 1.562500e-02 : f32
    %10 = vector.broadcast %cst_7 : f32 to vector<16x1xf32>
    %11 = arith.mulf %9, %10 : vector<16x1xf32>
    %12 = vector.broadcast %11 : vector<16x1xf32> to vector<16x64xf32>
    %13 = arith.subf %7, %12 : vector<16x64xf32>
    %14 = arith.mulf %13, %13 : vector<16x64xf32>
    %cst_8 = arith.constant dense<0.000000e+00> : vector<16xf32>
    %15 = vector.multi_reduction <add>, %14, %cst_8 [1] : vector<16x64xf32> to vector<16xf32>
    %16 = vector.shape_cast %15 : vector<16xf32> to vector<16x1xf32>
    %cst_9 = arith.constant 1.562500e-02 : f32
    %17 = vector.broadcast %cst_9 : f32 to vector<16x1xf32>
    %18 = arith.mulf %16, %17 : vector<16x1xf32>
    %cst_10 = arith.constant 9.99999974E-6 : f32
    %19 = vector.broadcast %cst_10 : f32 to vector<16x1xf32>
    %20 = arith.addf %18, %19 : vector<16x1xf32>
    %21 = math.rsqrt %20 : vector<16x1xf32>
    %22 = vector.broadcast %21 : vector<16x1xf32> to vector<16x64xf32>
    %23 = arith.mulf %13, %22 : vector<16x64xf32>
    %c0_11 = arith.constant 0 : index
    %c0_12 = arith.constant 0 : index
    %24 = vector.load %arg4[%c0_11, %c0_12] : memref<64x128xf32, #tpu.memory_space<vmem>>, vector<64x128xf32>
    %cst_13 = arith.constant dense<0.000000e+00> : vector<16x128xf32>
    %25 = tpu.matmul %23, %24, %cst_13 {dimension_numbers = #tpu.dot_dimension_numbers<[1], [0], [0], [1], [0, 0, 1, 1], [], []>} : vector<16x64xf32>, vector<64x128xf32>, vector<16x128xf32> -> vector<16x128xf32>
    %c0_14 = arith.constant 0 : index
    %c0_15 = arith.constant 0 : index
    %26 = vector.load %arg5[%c0_14, %c0_15] : memref<1x128xf32, #tpu.memory_space<vmem>>, vector<1x128xf32>
    %27 = vector.broadcast %26 : vector<1x128xf32> to vector<16x128xf32>
    %28 = arith.addf %25, %27 : vector<16x128xf32>
    %c0_16 = arith.constant 0 : index
    %c0_17 = arith.constant 0 : index
    %29 = vector.load %arg6[%c0_16, %c0_17] : memref<16x128xf32, #tpu.memory_space<vmem>>, vector<16x128xf32>
    tpu.vector_store %arg6[%c0_16, %c0_17], %28 {strides = array<i32>} : memref<16x128xf32, #tpu.memory_space<vmem>>, vector<16x128xf32>,
    return
  }
  func.func @transform_0(%arg0: i32) -> (i32, i32) {
    %c0_i32 = arith.constant 0 : i32
    %c0_i32_0 = arith.constant 0 : i32
    return %arg0, %c0_i32 : i32, i32
  }
  func.func @transform_1(%arg0: i32) -> (i32, i32) {
    %c0_i32 = arith.constant 0 : i32
    %c0_i32_0 = arith.constant 0 : i32
    %c0_i32_1 = arith.constant 0 : i32
    return %c0_i32, %c0_i32_0 : i32, i32
  }
  func.func @transform_2(%arg0: i32) -> (i32, i32) {
    %c0_i32 = arith.constant 0 : i32
    %c0_i32_0 = arith.constant 0 : i32
    %c0_i32_1 = arith.constant 0 : i32
    return %c0_i32, %c0_i32_0 : i32, i32
  }
  func.func @transform_3(%arg0: i32) -> (i32, i32) {
    %c0_i32 = arith.constant 0 : i32
    %c0_i32_0 = arith.constant 0 : i32
    %c0_i32_1 = arith.constant 0 : i32
    return %c0_i32, %c0_i32_0 : i32, i32
  }
  func.func @transform_4(%arg0: i32) -> (i32, i32) {
    %c0_i32 = arith.constant 0 : i32
    %c0_i32_0 = arith.constant 0 : i32
    %c0_i32_1 = arith.constant 0 : i32
    return %c0_i32, %c0_i32_0 : i32, i32
  }
  func.func @transform_5(%arg0: i32) -> (i32, i32) {
    %c0_i32 = arith.constant 0 : i32
    %c0_i32_0 = arith.constant 0 : i32
    return %arg0, %c0_i32 : i32, i32
  }
}

</mosaic_0001>

<bundles_post_ra>
// kernel: tpu_custom_call.1
= control target key start
LH: loop header
LB: loop body
LE: loop exit
PB: predicated region body
PF: predicated region fallthrough
CT: control target
= control target key end

     0   :  { %s505_s0 = inlined_call_operand.vmem [shape: f32[16,128], index: 0, kind: input, shape index: {}]   ;;  %s506_s1 = inlined_call_operand.vmem [shape: f32[128,64], index: 1, kind: input, shape index: {}]   ;;  %s507_s2 = inlined_call_operand.vmem [shape: f32[1,64], index: 2, kind: input, shape index: {}]   ;;  %s508_s3 = inlined_call_operand.vmem [shape: f32[64,128], index: 3, kind: input, shape index: {}]   ;;  %s509_s4 = inlined_call_operand.vmem [shape: f32[1,128], index: 4, kind: input, shape index: {}]   ;;  %s510_s5 = inlined_call_operand.hbm [shape: f32[16,128], index: 5, kind: output, shape index: {}]  }
   0x1   :  { %v38_v0 = vld [vmem:[%s506_s1 + $0x78] sm:$0xff]  ;;  %v37_v1 = vld [vmem:[%s506_s1 + $0x70] sm:$0xff]  ;;  %v36_v2 = vld [vmem:[%s506_s1 + $0x68] sm:$0xff] }
   0x2   :  { %296 = vmatprep.subr.mxu0 %v38_v0  ;;  %v35_v3 = vld [vmem:[%s506_s1 + $0x60] sm:$0xff]  ;;  %v34_v5 = vld [vmem:[%s506_s1 + $0x58] sm:$0xff] }
   0x3   :  { %297 = vmatpush3.msra.mxu0 %v38_v0  ;;  %v21_v4 = vld [vmem:[%s505_s0] sm:$0xff] }
   0x4   :  { %298 = vmatprep.subr.mxu0 %v37_v1  ;;  %328 = vmatprep.mubr.f32.mxu0 %v21_v4 }
   0x5   :  { %299 = vmatpush3.msra.mxu0 %v37_v1 }
   0x6   :  { %300 = vmatprep.subr.mxu0 %v36_v2 }
   0x7   :  { %301 = vmatpush3.msra.mxu0 %v36_v2 }
   0x8   :  { %10 = vsyncpa [#allocation3], 0  ;;  %302 = vmatprep.subr.mxu0 %v35_v3  ;;  %v33_v6 = vld [vmem:[%s506_s1 + $0x50] sm:$0xff]  ;;  %v32_v7 = vld [vmem:[%s506_s1 + $0x48] sm:$0xff]  ;;  %vm123_vm0 = vcmask 523264   ;;  %s379_s20 = smov [#allocation2]  }
   0x9   :  { %303 = vmatpush3.msra.mxu0 %v35_v3  ;;  %v31_v8 = vld [vmem:[%s506_s1 + $0x40] sm:$0xff]  ;;  %v30_v9 = vld [vmem:[%s506_s1 + $0x38] sm:$0xff]  ;;  %v29_v10 = vld [vmem:[%s506_s1 + $0x30] sm:$0xff]  ;;  %s253_s21 = sshll.u32 %s379_s20, 4  ;;  %s254_s21 = int_to_ptr.vmem [resolvable:$true] %s253_s21 }
   0xa   :  { %304 = vmatprep.subr.mxu0 %v34_v5  ;;  %v28_v11 = vld [vmem:[%s506_s1 + $0x28] sm:$0xff]  ;;  %v27_v12 = vld [vmem:[%s506_s1 + $0x20] sm:$0xff]  ;;  %v26_v13 = vld [vmem:[%s506_s1 + $0x18] sm:$0xff]  ;;  %s357_s22 = scalar_lea.vmem %s254_s21, 256  ;;  %p362_p1 = scmp.lt.s32.totalorder %s254_s21, %s254_s21 }
   0xb   :  { %305 = vmatpush3.msra.mxu0 %v34_v5  ;;  %v25_v14 = vld [vmem:[%s506_s1 + $0x10] sm:$0xff]  ;;  %v24_v15 = vld [vmem:[%s506_s1 + $0x8] sm:$0xff]  ;;  %v23_v16 = vld [vmem:[%s506_s1] sm:$0xff]  ;;  %p358_p0 = scmp.ne.s32.totalorder %s254_s21, %s357_s22  ;;  %p363_p2 = scmp.lt.s32.totalorder %s357_s22, %s357_s22 }
   0xc   :  { %306 = vmatprep.subr.mxu0 %v33_v6  ;;  %v22_v17 = vld [vmem:[%s505_s0 + $0x8] sm:$0xff]  ;;  %v264_v19 = vld [vmem:[%s507_s2] ss:$0 sm:$0xff]  ;;  %v157_v37 = vld [vmem:[%s508_s3 + $0x38] sm:$0xff] }
   0xd   :  { %307 = vmatpush3.msra.mxu0 %v33_v6  ;;  %331 = vmatprep.subr.mxu1 %v157_v37  ;;  %v156_v38 = vld [vmem:[%s508_s3 + $0x30] sm:$0xff]  ;;  %v155_v39 = vld [vmem:[%s508_s3 + $0x28] sm:$0xff]  ;;  %v154_v40 = vld [vmem:[%s508_s3 + $0x20] sm:$0xff]  ;;  %p364_p3 = por %p363_p2, %p362_p1 }
   0xe   :  { %308 = vmatprep.subr.mxu0 %v32_v7  ;;  %332 = vmatpush3.msra.mxu1 %v157_v37  ;;  %v153_v41 = vld [vmem:[%s508_s3 + $0x18] sm:$0xff]  ;;  %v152_v42 = vld [vmem:[%s508_s3 + $0x10] sm:$0xff]  ;;  %v151_v43 = vld [vmem:[%s508_s3 + $0x8] sm:$0xff] }
   0xf   :  { %309 = vmatpush3.msra.mxu0 %v32_v7  ;;  %333 = vmatprep.subr.mxu1 %v156_v38  ;;  %v150_v44 = vld [vmem:[%s508_s3] sm:$0xff]  ;;  %p365_p4 = pnand %p364_p3, %p358_p0 }
  0x10   :  { %310 = vmatprep.subr.mxu0 %v31_v8  ;;  %334 = vmatpush3.msra.mxu1 %v156_v38  ;;  %v265_v55 = vld [vmem:[%s509_s4] ss:$0 sm:$0xff] }
  0x11   :  { %311 = vmatpush3.msra.mxu0 %v31_v8  ;;  %335 = vmatprep.subr.mxu1 %v155_v39 }
  0x12   :  { %312 = vmatprep.subr.mxu0 %v30_v9  ;;  %336 = vmatpush3.msra.mxu1 %v155_v39 }
  0x13   :  { %313 = vmatpush3.msra.mxu0 %v30_v9  ;;  %337 = vmatprep.subr.mxu1 %v154_v40 }
  0x14   :  { %314 = vmatprep.subr.mxu0 %v29_v10  ;;  %338 = vmatpush3.msra.mxu1 %v154_v40 }
  0x15   :  { %315 = vmatpush3.msra.mxu0 %v29_v10  ;;  %339 = vmatprep.subr.mxu1 %v153_v41 }
  0x16   :  { %316 = vmatprep.subr.mxu0 %v28_v11  ;;  %340 = vmatpush3.msra.mxu1 %v153_v41 }
  0x17   :  { %317 = vmatpush3.msra.mxu0 %v28_v11  ;;  %341 = vmatprep.subr.mxu1 %v152_v42 }
  0x18   :  { %318 = vmatprep.subr.mxu0 %v27_v12  ;;  %342 = vmatpush3.msra.mxu1 %v152_v42 }
  0x19   :  { %319 = vmatpush3.msra.mxu0 %v27_v12  ;;  %343 = vmatprep.subr.mxu1 %v151_v43 }
  0x1a   :  { %320 = vmatprep.subr.mxu0 %v26_v13  ;;  %344 = vmatpush3.msra.mxu1 %v151_v43 }
  0x1b   :  { %321 = vmatpush3.msra.mxu0 %v26_v13  ;;  %345 = vmatprep.subr.mxu1 %v150_v44 }
  0x1c   :  { %322 = vmatprep.subr.mxu0 %v25_v14  ;;  %346 = vmatpush3.msra.mxu1 %v150_v44 }
  0x1d   :  { %323 = vmatpush3.msra.mxu0 %v25_v14 }
  0x1e   :  { %324 = vmatprep.subr.mxu0 %v24_v15 }
  0x1f   :  { %325 = vmatpush3.msra.mxu0 %v24_v15 }
  0x20   :  { %326 = vmatprep.subr.mxu0 %v23_v16 }
  0x21   :  { %327 = vmatpush3.msra.mxu0 %v23_v16 }
  0x22   :  { %329 = vmatmul.mubr.f32.vlgmr.msra.gmra.mxu0 %v22_v17 }
  0xe2   :  { %v330_v18 = vpop.f32.mrf.mxu0 }
  0xe3   :  { %v118_v21 = vadd.f32 %v330_v18, %v264_v19 }
  0xe4   :  { %v112_v20 = vpop.f32.mrf.mxu0 }
  0xe5   :  { %v113_v22 = vadd.f32 %v264_v19, %v112_v20  ;;  %v122_v24 = vmax.f32 %v118_v21, 0.0 }
  0xe7   :  { %v121_v23 = vmax.f32 %v113_v22, 0.0  ;;  %v127_v26 = vsel %vm123_vm0, %v122_v24, 0.0 }
  0xe9   :  { %v124_v25 = vsel %vm123_vm0, %v121_v23, 0.0 }
  0xea   :  { %125 = vadd.xlane.f32.xlu0 %v124_v25 }
  0xee   :  { %128 = vadd.xlane.f32.xlu0 %v127_v26 }
 0x173   :  { %v126_v27 = vpop.xlane.xlu0 %125 }
 0x174   :  { %v130_v28 = vmul.f32 0.015625, %v126_v27 }
 0x176   :  { %v132_v29 = vsub.f32 %v121_v23, %v130_v28 }
 0x177   :  { %v129_v30 = vpop.xlane.xlu0 %128 }
 0x178   :  { %v131_v31 = vmul.f32 0.015625, %v129_v30  ;;  %v134_v32 = vmul.f32 %v132_v29, %v132_v29 }
 0x17a   :  { %v133_v33 = vsub.f32 %v122_v24, %v131_v31  ;;  %v136_v34 = vsel %vm123_vm0, %v134_v32, 0.0 }
 0x17b   :  { %137 = vadd.xlane.f32.xlu1 %v136_v34 }
 0x17c   :  { %v135_v35 = vmul.f32 %v133_v33, %v133_v33 }
 0x17e   :  { %v139_v36 = vsel %vm123_vm0, %v135_v35, 0.0 }
 0x17f   :  { %140 = vadd.xlane.f32.xlu1 %v139_v36 }
 0x204   :  { %v138_v45 = vpop.xlane.xlu1 %137 }
 0x205   :  { %v142_v46 = vmul.f32 0.015625, %v138_v45 }
 0x207   :  { %v144_v47 = vadd.f32 1e-05, %v142_v46 }
 0x208   :  { %v141_v48 = vpop.xlane.xlu1 %140 }
 0x209   :  { %353 = vrsqrt.f32 %v144_v47  ;;  %v143_v49 = vmul.f32 0.015625, %v141_v48 }
 0x20b   :  { %v145_v50 = vadd.f32 1e-05, %v143_v49 }
 0x20d   :  { %355 = vrsqrt.f32 %v145_v50 }
 0x216   :  { %v354_v51 = vpop.eup %353 }
 0x217   :  { %v148_v52 = vmul.f32 %v354_v51, %v132_v29 }
 0x219   :  { %347 = vmatprep.mubr.msk.f32.mxu1 %vm123_vm0, %v148_v52 }
 0x21a   :  { %v356_v53 = vpop.eup %355 }
 0x21b   :  { %v149_v54 = vmul.f32 %v356_v53, %v133_v33 }
 0x21d   :  { %348 = vmatmul.mubr.msk.f32.vlgmr.msra.gmra.mxu1 %vm123_vm0, %v149_v54 }
 0x2dd   :  { %v349_v56 = vpop.f32.mrf.mxu1 }
 0x2de   :  { %v243_v57 = vadd.f32 %v349_v56, %v265_v55 }
 0x2df   :  { %v237_v58 = vpop.f32.mrf.mxu1 }
 0x2e0   :  { %247 = vst [vmem:[#allocation2 + $0x8] sm:$0xff] %v243_v57  ;;  %v238_v59 = vadd.f32 %v265_v55, %v237_v58 }
 0x2e2   :  { %246 = vst [vmem:[#allocation2] sm:$0xff] %v238_v59 }
 0x2e3   :  { %368 = shalt.err (!%p365_p4)
}
 0x2e4   :  { %s380_s23 = smov 128   ;;  %s381_s24 = smov 8  }
 0x2e5   :  { %259 = dma.vmem_to_hbm [thread:$0]  %s254_s21, 256, %s510_s5, [#allocation3], %s380_s23, %s380_s23, %s381_s24  }
 0x2e6   :  { %377 = dma.done.wait [#allocation3], 256  }
 0x2e7   :  { %378 = vsyncadd [#allocation3], 4294967040 }
 0x2e8   :  { %263 = vsyncpa [#allocation3], 1 }

</bundles_post_ra>
